<compile_context>
chip_gen: v7x
topology: tpu7x:2x2x1
jax: 0.10.0
libtpu: 0.0.40
codegen_flags: <defaults>
</compile_context>

<pallas_src>
import functools

import jax
import jax.numpy as jnp
from jax.experimental import pallas as pl
from jax.experimental.pallas import tpu as pltpu

EPS = 1e-5  # nn.LayerNorm default


def _postnorm_kernel(x_ref, w_ref, b_ref, g_ref, beta_ref, o_ref, *, d_real):
    # fn(x): Linear(dim, dim) -> y = x @ W + b, W laid out (D_in, D_out).
    # Operands stay in native dtype (bf16 hits the MXU directly), f32 accum.
    y = jnp.dot(x_ref[...], w_ref[...], preferred_element_type=jnp.float32)
    y = y + b_ref[...]  # bias is f32, shape (1, Dp), broadcast over rows

    # LayerNorm over the channel dim (biased variance, eps inside rsqrt).
    # Padded lanes (>= d_real) are exactly zero by construction (zero weight
    # columns + zero bias), so plain sums over the padded width equal the sums
    # over the real channels; divide by the real channel count only.
    inv_d = 1.0 / d_real
    s1 = jnp.sum(y, axis=-1, keepdims=True)
    s2 = jnp.sum(y * y, axis=-1, keepdims=True)
    mean = s1 * inv_d
    var = jnp.maximum(s2 * inv_d - mean * mean, 0.0)  # clamp f32 cancellation
    # Fold LN scale into a single per-row * per-channel multiply.
    scale = jax.lax.rsqrt(var + EPS)
    y_hat = (y - mean) * scale

    o_ref[...] = (y_hat * g_ref[...] + beta_ref[...]).astype(o_ref.dtype)


def _round_up(v, m):
    return (v + m - 1) // m * m


def post_norm(x, w, b, gamma, beta, *, tm=512,
              vmem_budget_bytes=24 * 1024 * 1024):
    """Fused LayerNorm(Linear(x)).

    x:              (B, N, D)   token layout (B, L, C)
    w:              (D, D)      laid out (in, out)  -- pass torch weight.T
    b, gamma, beta: (D,)        Linear bias, LayerNorm weight/bias
    """
    B, N, D = x.shape
    M = B * N

    # Lane-dense channel dim: pad to a multiple of 128 with zeros.
    Dp = _round_up(D, 128)

    # Row tile: multiple of 8, no larger than the (padded) token count, shrunk
    # until the double-buffered pipeline fits the conservative VMEM budget
    # (works within v7x's 64 MiB and v5e's small default scoped limit).
    tm = max(8, min(_round_up(tm, 8), _round_up(M, 8)))

    def est_bytes(tm_):
        return (2 * Dp * Dp * w.dtype.itemsize        # weight (double-buffered)
                + 2 * tm_ * Dp * x.dtype.itemsize     # x tiles
                + 2 * tm_ * Dp * x.dtype.itemsize     # out tiles
                + 6 * Dp * 4)                         # bias / gamma / beta

    while tm > 8 and est_bytes(tm) > vmem_budget_bytes:
        tm //= 2
    tm = max(8, (tm // 8) * 8)

    Mp = _round_up(M, tm)

    # Zero-pad operands only when needed (avoid extra HBM traffic otherwise).
    x2 = x.reshape(M, D)
    if Mp != M or Dp != D:
        x2 = jnp.pad(x2, ((0, Mp - M), (0, Dp - D)))
    w2 = w if Dp == D else jnp.pad(w, ((0, Dp - D), (0, Dp - D)))
    b2 = jnp.zeros((1, Dp), jnp.float32).at[0, :D].set(b.astype(jnp.float32))
    g2 = jnp.zeros((1, Dp), jnp.float32).at[0, :D].set(gamma.astype(jnp.float32))
    beta2 = jnp.zeros((1, Dp), jnp.float32).at[0, :D].set(beta.astype(jnp.float32))

    cost = pl.CostEstimate(
        flops=2 * Mp * Dp * Dp + 8 * Mp * Dp,
        transcendentals=Mp,  # one rsqrt per token row
        bytes_accessed=(2 * Mp * Dp * x.dtype.itemsize   # x in + out
                        + Dp * Dp * w.dtype.itemsize     # weight (resident)
                        + 3 * Dp * 4),
    )

    out = pl.pallas_call(
        functools.partial(_postnorm_kernel, d_real=D),
        out_shape=jax.ShapeDtypeStruct((Mp, Dp), x.dtype),
        grid_spec=pltpu.PrefetchScalarGridSpec(
            num_scalar_prefetch=0,
            grid=(Mp // tm,),
            in_specs=[
                pl.BlockSpec((tm, Dp), lambda i: (i, 0)),   # x tile (pipelined)
                pl.BlockSpec((Dp, Dp), lambda i: (0, 0)),   # weight (resident)
                pl.BlockSpec((1, Dp), lambda i: (0, 0)),    # Linear bias (f32)
                pl.BlockSpec((1, Dp), lambda i: (0, 0)),    # LN gamma (f32)
                pl.BlockSpec((1, Dp), lambda i: (0, 0)),    # LN beta (f32)
            ],
            out_specs=pl.BlockSpec((tm, Dp), lambda i: (i, 0)),
        ),
        compiler_params=pltpu.CompilerParams(
            dimension_semantics=("parallel",),
            vmem_limit_bytes=int(min(48 * 1024 * 1024,
                                     max(32 * 1024 * 1024, 2 * est_bytes(tm)))),
        ),
        cost_estimate=cost,
    )(x2, w2, b2, g2, beta2)

    if Mp != M or Dp != D:
        out = out[:M, :D]
    return out.reshape(B, N, D)


def post_norm_ref(x, w, b, gamma, beta):
    y = jnp.einsum("bnd,de->bne", x.astype(jnp.float32), w.astype(jnp.float32)) + b
    mean = jnp.mean(y, axis=-1, keepdims=True)
    var = jnp.mean((y - mean) ** 2, axis=-1, keepdims=True)
    return ((y - mean) * jax.lax.rsqrt(var + EPS)) * gamma + beta


if __name__ == "__main__":
    key = jax.random.PRNGKey(0)
    B, N, D = 2, 8, 32  # small shapes; real Swin dims (96..1024) hit the same path

    kx, kw, kb = jax.random.split(key, 3)
    x = jax.random.normal(kx, (B, N, D), dtype=jnp.float32)

    # Deterministic synthetic parameters (not a checkpoint load).
    w = jax.random.normal(kw, (D, D), dtype=jnp.float32) * 0.05   # fn = Linear(dim, dim), (in, out)
    b = jax.random.normal(kb, (D,), dtype=jnp.float32) * 0.01
    gamma = jnp.ones((D,), dtype=jnp.float32)                     # LayerNorm weight
    beta = jnp.zeros((D,), dtype=jnp.float32)                     # LayerNorm bias

    out = jax.block_until_ready(post_norm(x, w, b, gamma, beta))
    ref = jax.block_until_ready(post_norm_ref(x, w, b, gamma, beta))

    assert out.shape == (B, N, D)
    assert jnp.allclose(out, ref.astype(out.dtype), atol=1e-4, rtol=1e-4)
    print("KERNEL_OK")
</pallas_src>

<mosaic_0001>
module attributes {stable_mosaic.version = 11 : i64} {
  func.func @_postnorm_kernel(%arg0: i32, %arg1: memref<16x128xf32, #tpu.memory_space<vmem>>, %arg2: memref<128x128xf32, #tpu.memory_space<vmem>>, %arg3: memref<1x128xf32, #tpu.memory_space<vmem>>, %arg4: memref<1x128xf32, #tpu.memory_space<vmem>>, %arg5: memref<1x128xf32, #tpu.memory_space<vmem>>, %arg6: memref<16x128xf32, #tpu.memory_space<vmem>>) attributes {dimension_semantics = [#tpu.dimension_semantics<parallel>], iteration_bounds = array<i64: 1>, scalar_prefetch = 0 : i64, scratch_operands = 0 : i64, tpu.core_type = #tpu.core_type<tc>, window_params = [{transform_indices = @transform_0, window_bounds = array<i64: 16, 128>}, {pipeline_mode = #tpu.pipeline_mode<synchronous>, transform_indices = @transform_1, window_bounds = array<i64: 128, 128>}, {pipeline_mode = #tpu.pipeline_mode<synchronous>, transform_indices = @transform_2, window_bounds = array<i64: 1, 128>}, {pipeline_mode = #tpu.pipeline_mode<synchronous>, transform_indices = @transform_3, window_bounds = array<i64: 1, 128>}, {pipeline_mode = #tpu.pipeline_mode<synchronous>, transform_indices = @transform_4, window_bounds = array<i64: 1, 128>}, {transform_indices = @transform_5, window_bounds = array<i64: 16, 128>}]} {
    %c0 = arith.constant 0 : index
    %c0_0 = arith.constant 0 : index
    %0 = vector.load %arg1[%c0, %c0_0] : memref<16x128xf32, #tpu.memory_space<vmem>>, vector<16x128xf32>
    %c0_1 = arith.constant 0 : index
    %c0_2 = arith.constant 0 : index
    %1 = vector.load %arg2[%c0_1, %c0_2] : memref<128x128xf32, #tpu.memory_space<vmem>>, vector<128x128xf32>
    %cst = arith.constant dense<0.000000e+00> : vector<16x128xf32>
    %2 = tpu.matmul %0, %1, %cst {dimension_numbers = #tpu.dot_dimension_numbers<[1], [0], [0], [1], [0, 0, 1, 1], [], []>} : vector<16x128xf32>, vector<128x128xf32>, vector<16x128xf32> -> vector<16x128xf32>
    %c0_3 = arith.constant 0 : index
    %c0_4 = arith.constant 0 : index
    %3 = vector.load %arg3[%c0_3, %c0_4] : memref<1x128xf32, #tpu.memory_space<vmem>>, vector<1x128xf32>
    %4 = vector.broadcast %3 : vector<1x128xf32> to vector<16x128xf32>
    %5 = arith.addf %2, %4 : vector<16x128xf32>
    %cst_5 = arith.constant dense<0.000000e+00> : vector<16xf32>
    %6 = vector.multi_reduction <add>, %5, %cst_5 [1] : vector<16x128xf32> to vector<16xf32>
    %7 = vector.shape_cast %6 : vector<16xf32> to vector<16x1xf32>
    %8 = arith.mulf %5, %5 : vector<16x128xf32>
    %cst_6 = arith.constant dense<0.000000e+00> : vector<16xf32>
    %9 = vector.multi_reduction <add>, %8, %cst_6 [1] : vector<16x128xf32> to vector<16xf32>
    %10 = vector.shape_cast %9 : vector<16xf32> to vector<16x1xf32>
    %cst_7 = arith.constant 3.125000e-02 : f32
    %11 = vector.broadcast %cst_7 : f32 to vector<16x1xf32>
    %12 = arith.mulf %7, %11 : vector<16x1xf32>
    %cst_8 = arith.constant 3.125000e-02 : f32
    %13 = vector.broadcast %cst_8 : f32 to vector<16x1xf32>
    %14 = arith.mulf %10, %13 : vector<16x1xf32>
    %15 = arith.mulf %12, %12 : vector<16x1xf32>
    %16 = arith.subf %14, %15 : vector<16x1xf32>
    %cst_9 = arith.constant 0.000000e+00 : f32
    %17 = vector.broadcast %cst_9 : f32 to vector<16x1xf32>
    %18 = arith.maximumf %16, %17 : vector<16x1xf32>
    %cst_10 = arith.constant 9.99999974E-6 : f32
    %19 = vector.broadcast %cst_10 : f32 to vector<16x1xf32>
    %20 = arith.addf %18, %19 : vector<16x1xf32>
    %21 = math.rsqrt %20 : vector<16x1xf32>
    %22 = vector.broadcast %12 : vector<16x1xf32> to vector<16x128xf32>
    %23 = arith.subf %5, %22 : vector<16x128xf32>
    %24 = vector.broadcast %21 : vector<16x1xf32> to vector<16x128xf32>
    %25 = arith.mulf %23, %24 : vector<16x128xf32>
    %c0_11 = arith.constant 0 : index
    %c0_12 = arith.constant 0 : index
    %26 = vector.load %arg4[%c0_11, %c0_12] : memref<1x128xf32, #tpu.memory_space<vmem>>, vector<1x128xf32>
    %27 = vector.broadcast %26 : vector<1x128xf32> to vector<16x128xf32>
    %28 = arith.mulf %25, %27 : vector<16x128xf32>
    %c0_13 = arith.constant 0 : index
    %c0_14 = arith.constant 0 : index
    %29 = vector.load %arg5[%c0_13, %c0_14] : memref<1x128xf32, #tpu.memory_space<vmem>>, vector<1x128xf32>
    %30 = vector.broadcast %29 : vector<1x128xf32> to vector<16x128xf32>
    %31 = arith.addf %28, %30 : vector<16x128xf32>
    %c0_15 = arith.constant 0 : index
    %c0_16 = arith.constant 0 : index
    %32 = vector.load %arg6[%c0_15, %c0_16] : memref<16x128xf32, #tpu.memory_space<vmem>>, vector<16x128xf32>
    tpu.vector_store %arg6[%c0_15, %c0_16], %31 {strides = array<i32>} : memref<16x128xf32, #tpu.memory_space<vmem>>, vector<16x128xf32>,
    return
  }
  func.func @transform_0(%arg0: i32) -> (i32, i32) {
    %c0_i32 = arith.constant 0 : i32
    %c0_i32_0 = arith.constant 0 : i32
    return %arg0, %c0_i32 : i32, i32
  }
  func.func @transform_1(%arg0: i32) -> (i32, i32) {
    %c0_i32 = arith.constant 0 : i32
    %c0_i32_0 = arith.constant 0 : i32
    %c0_i32_1 = arith.constant 0 : i32
    return %c0_i32, %c0_i32_0 : i32, i32
  }
  func.func @transform_2(%arg0: i32) -> (i32, i32) {
    %c0_i32 = arith.constant 0 : i32
    %c0_i32_0 = arith.constant 0 : i32
    %c0_i32_1 = arith.constant 0 : i32
    return %c0_i32, %c0_i32_0 : i32, i32
  }
  func.func @transform_3(%arg0: i32) -> (i32, i32) {
    %c0_i32 = arith.constant 0 : i32
    %c0_i32_0 = arith.constant 0 : i32
    %c0_i32_1 = arith.constant 0 : i32
    return %c0_i32, %c0_i32_0 : i32, i32
  }
  func.func @transform_4(%arg0: i32) -> (i32, i32) {
    %c0_i32 = arith.constant 0 : i32
    %c0_i32_0 = arith.constant 0 : i32
    %c0_i32_1 = arith.constant 0 : i32
    return %c0_i32, %c0_i32_0 : i32, i32
  }
  func.func @transform_5(%arg0: i32) -> (i32, i32) {
    %c0_i32 = arith.constant 0 : i32
    %c0_i32_0 = arith.constant 0 : i32
    return %arg0, %c0_i32 : i32, i32
  }
}

</mosaic_0001>

<bundles_post_ra>
// kernel: tpu_custom_call.1
= control target key start
LH: loop header
LB: loop body
LE: loop exit
PB: predicated region body
PF: predicated region fallthrough
CT: control target
= control target key end

     0   :  { %10 = vsyncpa [#allocation3], 0  ;;  %s473_s0 = inlined_call_operand.hbm [shape: f32[16,128], index: 0, kind: input, shape index: {}]   ;;  %s474_s1 = inlined_call_operand.hbm [shape: f32[128,128], index: 1, kind: input, shape index: {}]   ;;  %s475_s2 = inlined_call_operand.vmem [shape: f32[1,128], index: 2, kind: input, shape index: {}]   ;;  %s476_s3 = inlined_call_operand.vmem [shape: f32[1,128], index: 3, kind: input, shape index: {}]   ;;  %s477_s4 = inlined_call_operand.vmem [shape: f32[1,128], index: 4, kind: input, shape index: {}]   ;;  %s478_s5 = inlined_call_operand.hbm [shape: f32[16,128], index: 5, kind: output, shape index: {}]  }
   0x1   :  { %11 = vsyncpa [#allocation6], 0 }
   0x2   :  { %12 = vsyncpa [#allocation4], 0  ;;  %s384_s18 = smov [#allocation2]   ;;  %s312_s22 = scalar_lea.hbm %s473_s0, 256 }
   0x3   :  { %s18_s19 = sshll.u32 %s384_s18, 4  ;;  %p313_p0 = scmp.ne.s32.totalorder %s473_s0, %s312_s22  ;;  %s19_s19 = int_to_ptr.vmem [resolvable:$true] %s18_s19 }
   0x4   :  { %p316_p1 = scmp.lt.u32.totalorder %s312_s22, %s473_s0 }
   0x6   :  { %p318_p2 = pnand %p316_p1, %p313_p0 }
   0x8   :  { %321 = shalt.err (!%p318_p2)
}
   0x9   :  { %s322_s27 = scalar_lea.vmem %s19_s19, 256  ;;  %p327_p4 = scmp.lt.s32.totalorder %s19_s19, %s19_s19 }
   0xa   :  { %p323_p3 = scmp.ne.s32.totalorder %s19_s19, %s322_s27  ;;  %p328_p5 = scmp.lt.s32.totalorder %s322_s27, %s322_s27 }
   0xc   :  { %p329_p6 = por %p328_p5, %p327_p4 }
   0xe   :  { %p330_p7 = pnand %p329_p6, %p323_p3 }
  0x10   :  { %333 = shalt.err (!%p330_p7)
}
  0x11   :  { %s385_s28 = smov 128   ;;  %s386_s29 = smov 8  }
  0x12   :  { %24 = dma.hbm_to_vmem [thread:$0]  %s473_s0, 256, %s19_s19, [#allocation3], %s385_s28, %s385_s28, %s386_s29  }
  0x13   :  { %s387_s7 = smov [#allocation5]   ;;  %s334_s11 = scalar_lea.hbm %s474_s1, 2048 }
  0x14   :  { %s30_s8 = sshll.u32 %s387_s7, 4  ;;  %p335_p8 = scmp.ne.s32.totalorder %s474_s1, %s334_s11  ;;  %s31_s8 = int_to_ptr.vmem [resolvable:$true] %s30_s8 }
  0x15   :  { %p338_p9 = scmp.lt.u32.totalorder %s334_s11, %s474_s1 }
  0x17   :  { %p340_p10 = pnand %p338_p9, %p335_p8 }
  0x19   :  { %343 = shalt.err (!%p340_p10)
}
  0x1a   :  { %s344_s16 = scalar_lea.vmem %s31_s8, 2048  ;;  %p349_p12 = scmp.lt.s32.totalorder %s31_s8, %s31_s8 }
  0x1b   :  { %p345_p11 = scmp.ne.s32.totalorder %s31_s8, %s344_s16  ;;  %p350_p13 = scmp.lt.s32.totalorder %s344_s16, %s344_s16 }
  0x1d   :  { %p351_p0 = por %p350_p13, %p349_p12 }
  0x1f   :  { %p352_p1 = pnand %p351_p0, %p345_p11 }
  0x21   :  { %355 = shalt.err (!%p352_p1)
}
  0x22   :  { %36 = dma.hbm_to_vmem [thread:$0]  %s474_s1, 2048, %s31_s8, [#allocation6], %s385_s28, %s385_s28, %s386_s29  }
  0x23   :  { %378 = dma.done.wait [#allocation3], 256  }
  0x24   :  { %379 = vsyncadd [#allocation3], 4294967040 }
  0x25   :  { %380 = dma.done.wait [#allocation6], 2048  }
  0x26   :  { %381 = vsyncadd [#allocation6], 4294965248  ;;  %v51_v0 = vld [vmem:[#allocation5] sm:$0xff]  ;;  %v52_v1 = vld [vmem:[#allocation5 + $0x8] sm:$0xff]  ;;  %s388_s22 = smov [#allocation7]  }
  0x27   :  { %v53_v2 = vld [vmem:[#allocation5 + $0x10] sm:$0xff]  ;;  %v271_v3 = vpack.c.bf16 %v52_v1, %v51_v0  ;;  %v54_v4 = vld [vmem:[#allocation5 + $0x18] sm:$0xff]  ;;  %v55_v6 = vld [vmem:[#allocation5 + $0x20] sm:$0xff]  ;;  %s202_s23 = sshll.u32 %s388_s22, 4  ;;  %s203_s23 = int_to_ptr.vmem [resolvable:$true] %s202_s23 }
  0x28   :  { %v275_v5 = vpack.c.bf16 %v54_v4, %v53_v2  ;;  %v56_v7 = vld [vmem:[#allocation5 + $0x28] sm:$0xff]  ;;  %v49_v9 = vld [vmem:[#allocation2] sm:$0xff]  ;;  %v58_v11 = vld [vmem:[#allocation5 + $0x38] sm:$0xff]  ;;  %s356_s24 = scalar_lea.vmem %s203_s23, 256  ;;  %p361_p3 = scmp.lt.s32.totalorder %s203_s23, %s203_s23 }
  0x29   :  { %272 = vmatprep.subr.bf16.mxu0 %v271_v3  ;;  %v279_v8 = vpack.c.bf16 %v56_v7, %v55_v6  ;;  %v57_v10 = vld [vmem:[#allocation5 + $0x30] sm:$0xff]  ;;  %268 = vmatprep.mubr.f32.mxu0 %v49_v9  ;;  %v59_v13 = vld [vmem:[#allocation5 + $0x40] sm:$0xff]  ;;  %v60_v14 = vld [vmem:[#allocation5 + $0x48] sm:$0xff]  ;;  %p357_p2 = scmp.ne.s32.totalorder %s203_s23, %s356_s24  ;;  %p362_p4 = scmp.lt.s32.totalorder %s356_s24, %s356_s24 }
  0x2a   :  { %274 = vmatpush3.bf16.msra.mxu0 %v271_v3  ;;  %v283_v12 = vpack.c.bf16 %v58_v11, %v57_v10  ;;  %v287_v15 = vpack.c.bf16 %v60_v14, %v59_v13  ;;  %v61_v16 = vld [vmem:[#allocation5 + $0x50] sm:$0xff]  ;;  %v62_v17 = vld [vmem:[#allocation5 + $0x58] sm:$0xff]  ;;  %v63_v19 = vld [vmem:[#allocation5 + $0x60] sm:$0xff] }
  0x2b   :  { %276 = vmatprep.subr.bf16.mxu0 %v275_v5  ;;  %v291_v18 = vpack.c.bf16 %v62_v17, %v61_v16  ;;  %v64_v20 = vld [vmem:[#allocation5 + $0x68] sm:$0xff]  ;;  %v65_v22 = vld [vmem:[#allocation5 + $0x70] sm:$0xff]  ;;  %v66_v23 = vld [vmem:[#allocation5 + $0x78] sm:$0xff]  ;;  %p363_p5 = por %p362_p4, %p361_p3 }
  0x2c   :  { %v295_v21 = vpack.c.bf16 %v64_v20, %v63_v19  ;;  %v299_v24 = vpack.c.bf16 %v66_v23, %v65_v22  ;;  %v50_v25 = vld [vmem:[#allocation2 + $0x8] sm:$0xff]  ;;  %v215_v26 = vld [vmem:[%s475_s2] ss:$0 sm:$0xff] }
  0x2d   :  { %v216_v51 = vld [vmem:[%s476_s3] ss:$0 sm:$0xff]  ;;  %p364_p6 = pnand %p363_p5, %p357_p2 }
  0x2e   :  { %278 = vmatpush3.bf16.msra.mxu0 %v275_v5  ;;  %v217_v53 = vld [vmem:[%s477_s4] ss:$0 sm:$0xff] }
  0x2f   :  { %280 = vmatprep.subr.bf16.mxu0 %v279_v8 }
  0x32   :  { %282 = vmatpush3.bf16.msra.mxu0 %v279_v8 }
  0x33   :  { %284 = vmatprep.subr.bf16.mxu0 %v283_v12 }
  0x36   :  { %286 = vmatpush3.bf16.msra.mxu0 %v283_v12 }
  0x37   :  { %288 = vmatprep.subr.bf16.mxu0 %v287_v15 }
  0x3a   :  { %290 = vmatpush3.bf16.msra.mxu0 %v287_v15 }
  0x3b   :  { %292 = vmatprep.subr.bf16.mxu0 %v291_v18 }
  0x3e   :  { %294 = vmatpush3.bf16.msra.mxu0 %v291_v18 }
  0x3f   :  { %296 = vmatprep.subr.bf16.mxu0 %v295_v21 }
  0x42   :  { %298 = vmatpush3.bf16.msra.mxu0 %v295_v21 }
  0x43   :  { %300 = vmatprep.subr.bf16.mxu0 %v299_v24 }
  0x46   :  { %302 = vmatpush3.bf16.msra.mxu0 %v299_v24 }
  0x49   :  { %269 = vmatmul.mubr.f32.vlgmr.msra.gmra.mrb[0].mxu0 %v50_v25 }
 0x11c   :  { %v270_v27 = vpop.f32.mrb[0].mxu0 }
 0x11d   :  { %v140_v28 = vpop.f32.mrb[1].mxu0  ;;  %v146_v30 = vadd.f32 %v270_v27, %v215_v26 }
 0x11e   :  { %v141_v29 = vadd.f32 %v215_v26, %v140_v28 }
 0x11f   :  { %v154_v32 = vmul.f32 %v146_v30, %v146_v30 }
 0x120   :  { %149 = vadd.xlane.f32.xlu0 %v141_v29  ;;  %v153_v31 = vmul.f32 %v141_v29, %v141_v29 }
 0x122   :  { %155 = vadd.xlane.f32.xlu1 %v153_v31 }
 0x124   :  { %151 = vadd.xlane.f32.xlu0 %v146_v30 }
 0x126   :  { %157 = vadd.xlane.f32.xlu1 %v154_v32 }
 0x1ad   :  { %v150_v33 = vpop.xlane.xlu0 %149 }
 0x1ae   :  { %v159_v34 = vmul.f32 0.03125, %v150_v33 }
 0x1af   :  { %v156_v35 = vpop.xlane.xlu1 %155 }
 0x1b0   :  { %v163_v36 = vmul.f32 %v159_v34, %v159_v34  ;;  %v161_v37 = vmul.f32 0.03125, %v156_v35  ;;  %v173_v49 = vsub.f32 %v141_v29, %v159_v34 }
 0x1b1   :  { %v152_v38 = vpop.xlane.xlu0 %151 }
 0x1b2   :  { %v165_v39 = vsub.f32 %v161_v37, %v163_v36  ;;  %v160_v40 = vmul.f32 0.03125, %v152_v38 }
 0x1b3   :  { %v158_v41 = vpop.xlane.xlu1 %157 }
 0x1b4   :  { %v167_v42 = vmax.f32 %v165_v39, 0.0  ;;  %v164_v43 = vmul.f32 %v160_v40, %v160_v40  ;;  %v162_v44 = vmul.f32 0.03125, %v158_v41  ;;  %v174_v54 = vsub.f32 %v146_v30, %v160_v40 }
 0x1b6   :  { %v169_v45 = vadd.f32 1e-05, %v167_v42  ;;  %v166_v46 = vsub.f32 %v162_v44, %v164_v43 }
 0x1b8   :  { %308 = vrsqrt.f32 %v169_v45  ;;  %v168_v47 = vmax.f32 %v166_v46, 0.0 }
 0x1ba   :  { %v170_v48 = vadd.f32 1e-05, %v168_v47 }
 0x1bc   :  { %310 = vrsqrt.f32 %v170_v48 }
 0x1c2   :  { %v309_v50 = vpop.eup %308 }
 0x1c3   :  { %v175_v52 = vmul.f32 %v309_v50, %v173_v49 }
 0x1c5   :  { %v184_v55 = vmul.f32 %v216_v51, %v175_v52 }
 0x1c6   :  { %v311_v56 = vpop.eup %310 }
 0x1c7   :  { %v176_v57 = vmul.f32 %v311_v56, %v174_v54  ;;  %v193_v58 = vadd.f32 %v217_v53, %v184_v55 }
 0x1c9   :  { %v185_v59 = vmul.f32 %v216_v51, %v176_v57  ;;  %195 = vst [vmem:[#allocation7] sm:$0xff] %v193_v58 }
 0x1cb   :  { %v194_v60 = vadd.f32 %v217_v53, %v185_v59 }
 0x1cd   :  { %196 = vst [vmem:[#allocation7 + $0x8] sm:$0xff] %v194_v60 }
 0x1ce   :  { %367 = shalt.err (!%p364_p6)
}
 0x1cf   :  { %s368_s25 = scalar_lea.hbm %s478_s5, 256 }
 0x1d0   :  { %p369_p7 = scmp.ne.s32.totalorder %s478_s5, %s368_s25  ;;  %p372_p8 = scmp.lt.u32.totalorder %s368_s25, %s478_s5 }
 0x1d2   :  { %p374_p9 = pnand %p372_p8, %p369_p7 }
 0x1d4   :  { %377 = shalt.err (!%p374_p9)
}
 0x1d5   :  { %208 = dma.vmem_to_hbm [thread:$0]  %s203_s23, 256, %s478_s5, [#allocation4], %s385_s28, %s385_s28, %s386_s29  }
 0x1d6   :  { %382 = dma.done.wait [#allocation4], 256  }
 0x1d7   :  { %383 = vsyncadd [#allocation4], 4294967040 }
 0x1d8   :  { %212 = vsyncpa [#allocation3], 1 }
 0x1d9   :  { %213 = vsyncpa [#allocation6], 1 }
 0x1da   :  { %214 = vsyncpa [#allocation4], 1 }

</bundles_post_ra>
